<compile_context>
chip_gen: v6e
topology: v6e:2x2x1
jax: 0.10.0
libtpu: 0.0.40
codegen_flags: <defaults>
</compile_context>

<pallas_src>
import functools

import jax
import jax.numpy as jnp
from jax.experimental import pallas as pl
from jax.experimental.pallas import tpu as pltpu

IMAGE_SIZE = 256            # e.g. a 16x16 single-channel image
H0, H1, C = 100, 50, 10     # logical (PyTorch) layer widths
H0_PAD, H1_PAD, C_PAD = 128, 128, 128   # lane-aligned padded widths
NEG_BIG = -1e30             # bias for padded output lanes (kills them in softmax)


def mlp_logsoftmax_kernel(x_ref, w0_ref, b0_ref, w1_ref, b1_ref,
                          w2_ref, b2_ref, o_ref):
    """Fused MLP hot path: 3 matmuls + ReLUs + numerically-stable log_softmax.

    Matmul operands may be bf16 (MXU accumulates in f32); all elementwise
    math (bias, ReLU, exp/log) stays in f32.
    """
    # Cast x to the matmul operand dtype in-kernel (no wrapper-side HBM pass).
    x = x_ref[...].astype(w0_ref.dtype)                               # (tb, 256)

    h0 = jnp.dot(x, w0_ref[...], preferred_element_type=jnp.float32)
    h0 = jnp.maximum(h0 + b0_ref[...], 0.0)                           # (tb, 128) f32

    h1 = jnp.dot(h0.astype(w1_ref.dtype), w1_ref[...],
                 preferred_element_type=jnp.float32)
    h1 = jnp.maximum(h1 + b1_ref[...], 0.0)                           # (tb, 128) f32

    logits = jnp.dot(h1.astype(w2_ref.dtype), w2_ref[...],
                     preferred_element_type=jnp.float32)
    logits = logits + b2_ref[...]                                     # (tb, 128) f32
    # padded lanes are ~ -1e30: they never win the max and exp() underflows to 0

    m = jnp.max(logits, axis=1, keepdims=True)
    shifted = logits - m
    lse = jnp.log(jnp.sum(jnp.exp(shifted), axis=1, keepdims=True))
    o_ref[...] = (shifted - lse).astype(o_ref.dtype)                  # lane-dense store


def _round_up(n, m):
    return ((n + m - 1) // m) * m


@functools.partial(jax.jit, static_argnames=("block_b",))
def model_b_forward(x, packed_params, block_b=1024):
    """x: any shape whose trailing dims flatten to IMAGE_SIZE per row.

    packed_params: output of pack_params() (padded, [in, out] layout).
    block_b: batch tile; large (>=512) for throughput, shrunk for tiny batches.
    """
    w0, b0, w1, b1, w2, b2 = packed_params
    x2d = x.reshape(-1, IMAGE_SIZE)     # keep native dtype; cast happens in-kernel
    B = x2d.shape[0]

    # Batch tile: multiple of 8 (f32 sublanes), no larger than needed.
    tb = min(block_b, _round_up(B, 8))
    grid = (pl.cdiv(B, tb),)

    # Advisory cost for XLA's scheduler around the custom call.
    x_bytes = x2d.size * x2d.dtype.itemsize
    w_bytes = sum(int(a.size) * a.dtype.itemsize for a in (w0, b0, w1, b1, w2, b2))
    out_bytes = B * C_PAD * 4
    flops = 2 * B * (IMAGE_SIZE * H0_PAD + H0_PAD * H1_PAD + H1_PAD * C_PAD)
    cost = pl.CostEstimate(flops=flops,
                           transcendentals=B * (C_PAD + 1),
                           bytes_accessed=x_bytes + w_bytes + out_bytes)

    out_padded = pl.pallas_call(
        mlp_logsoftmax_kernel,
        out_shape=jax.ShapeDtypeStruct((B, C_PAD), jnp.float32),
        grid_spec=pltpu.PrefetchScalarGridSpec(
            num_scalar_prefetch=0,
            grid=grid,
            in_specs=[
                pl.BlockSpec((tb, IMAGE_SIZE), lambda i: (i, 0)),
                pl.BlockSpec((IMAGE_SIZE, H0_PAD), lambda i: (0, 0)),
                pl.BlockSpec((1, H0_PAD), lambda i: (0, 0)),
                pl.BlockSpec((H0_PAD, H1_PAD), lambda i: (0, 0)),
                pl.BlockSpec((1, H1_PAD), lambda i: (0, 0)),
                pl.BlockSpec((H1_PAD, C_PAD), lambda i: (0, 0)),
                pl.BlockSpec((1, C_PAD), lambda i: (0, 0)),
            ],
            out_specs=pl.BlockSpec((tb, C_PAD), lambda i: (i, 0)),
        ),
        compiler_params=pltpu.CompilerParams(
            dimension_semantics=("parallel",)),   # megacore sharding on v7x
        cost_estimate=cost,
    )(x2d, w0, b0, w1, b1, w2, b2)

    return out_padded[:, :C]   # drop the padded (garbage, ~-1e30) lanes


def init_params(key):
    """Deterministic init mimicking nn.Linear (uniform +-1/sqrt(fan_in)).

    Returned unpadded, f32, [in, out] layout (transpose of PyTorch's [out, in]).
    """
    ks = jax.random.split(key, 6)

    def linear(kw, kb, fan_in, fan_out):
        bound = 1.0 / jnp.sqrt(jnp.float32(fan_in))
        w = jax.random.uniform(kw, (fan_in, fan_out), jnp.float32, -bound, bound)
        b = jax.random.uniform(kb, (1, fan_out), jnp.float32, -bound, bound)
        return w, b

    w0, b0 = linear(ks[0], ks[1], IMAGE_SIZE, H0)
    w1, b1 = linear(ks[2], ks[3], H0, H1)
    w2, b2 = linear(ks[4], ks[5], H1, C)
    return (w0, b0, w1, b1, w2, b2)


def pack_params(params, compute_dtype=jnp.bfloat16):
    """Pad to lane-aligned widths and cast matmul operands to compute_dtype.

    Hidden pads: zero weights + zero biases (ReLU keeps them exactly 0).
    Output pads: zero weights + NEG_BIG bias (never affects max / logsumexp).
    Biases stay f32 (elementwise math is f32 on every chip generation).
    """
    w0, b0, w1, b1, w2, b2 = params

    def pad_w(w, in_pad, out_pad):
        wp = jnp.zeros((in_pad, out_pad), jnp.float32)
        wp = wp.at[:w.shape[0], :w.shape[1]].set(w)
        return wp.astype(compute_dtype)

    def pad_b(b, out_pad, fill):
        bp = jnp.full((1, out_pad), fill, jnp.float32)
        bp = bp.at[:, :b.shape[1]].set(b)
        return bp  # keep f32

    return (pad_w(w0, IMAGE_SIZE, H0_PAD), pad_b(b0, H0_PAD, 0.0),
            pad_w(w1, H0_PAD, H1_PAD),     pad_b(b1, H1_PAD, 0.0),
            pad_w(w2, H1_PAD, C_PAD),      pad_b(b2, C_PAD, NEG_BIG))


def reference_forward(x, params):
    """Pure-JAX f32 reference of ModelB.forward (unpadded params)."""
    w0, b0, w1, b1, w2, b2 = params
    x2d = x.reshape(-1, IMAGE_SIZE).astype(jnp.float32)
    h0 = jax.nn.relu(x2d @ w0 + b0)
    h1 = jax.nn.relu(h0 @ w1 + b1)
    logits = h1 @ w2 + b2
    return jax.nn.log_softmax(logits, axis=1)


if __name__ == "__main__":
    key = jax.random.PRNGKey(0)
    k_params, k_x = jax.random.split(key)
    params = init_params(k_params)

    # batch=8, single-channel 16x16 images (NCHW) -> flattened rows of 256
    x = jax.random.normal(k_x, (8, 1, 16, 16), dtype=jnp.float32)

    ref = reference_forward(x, params)

    # f32 operand path: near bit-exact check against the f32 reference.
    packed_f32 = pack_params(params, compute_dtype=jnp.float32)
    out_f32 = jax.block_until_ready(model_b_forward(x, packed_f32))
    assert out_f32.shape == (8, C)
    assert jnp.allclose(out_f32, ref, atol=1e-5, rtol=1e-5)

    # bf16 operand path (preferred on v6e/v7x): f32 accumulation, loose check.
    packed_bf16 = pack_params(params, compute_dtype=jnp.bfloat16)
    out_bf16 = jax.block_until_ready(model_b_forward(x, packed_bf16))
    assert out_bf16.shape == (8, C)
    assert jnp.allclose(out_bf16, ref, atol=5e-2, rtol=5e-2)

    print("KERNEL_OK")
</pallas_src>

<mosaic_0001>
module attributes {stable_mosaic.version = 11 : i64} {
  func.func @mlp_logsoftmax_kernel(%arg0: i32, %arg1: memref<8x256xf32, #tpu.memory_space<vmem>>, %arg2: memref<256x128xf32, #tpu.memory_space<vmem>>, %arg3: memref<1x128xf32, #tpu.memory_space<vmem>>, %arg4: memref<128x128xf32, #tpu.memory_space<vmem>>, %arg5: memref<1x128xf32, #tpu.memory_space<vmem>>, %arg6: memref<128x128xf32, #tpu.memory_space<vmem>>, %arg7: memref<1x128xf32, #tpu.memory_space<vmem>>, %arg8: memref<8x128xf32, #tpu.memory_space<vmem>>) attributes {dimension_semantics = [#tpu.dimension_semantics<parallel>], iteration_bounds = array<i64: 1>, scalar_prefetch = 0 : i64, scratch_operands = 0 : i64, tpu.core_type = #tpu.core_type<tc>, window_params = [{transform_indices = @transform_0, window_bounds = array<i64: 8, 256>}, {pipeline_mode = #tpu.pipeline_mode<synchronous>, transform_indices = @transform_1, window_bounds = array<i64: 256, 128>}, {pipeline_mode = #tpu.pipeline_mode<synchronous>, transform_indices = @transform_2, window_bounds = array<i64: 1, 128>}, {pipeline_mode = #tpu.pipeline_mode<synchronous>, transform_indices = @transform_3, window_bounds = array<i64: 128, 128>}, {pipeline_mode = #tpu.pipeline_mode<synchronous>, transform_indices = @transform_4, window_bounds = array<i64: 1, 128>}, {pipeline_mode = #tpu.pipeline_mode<synchronous>, transform_indices = @transform_5, window_bounds = array<i64: 128, 128>}, {pipeline_mode = #tpu.pipeline_mode<synchronous>, transform_indices = @transform_6, window_bounds = array<i64: 1, 128>}, {transform_indices = @transform_7, window_bounds = array<i64: 8, 128>}]} {
    %c0 = arith.constant 0 : index
    %c0_0 = arith.constant 0 : index
    %0 = vector.load %arg1[%c0, %c0_0] : memref<8x256xf32, #tpu.memory_space<vmem>>, vector<8x256xf32>
    %c0_1 = arith.constant 0 : index
    %c0_2 = arith.constant 0 : index
    %1 = vector.load %arg2[%c0_1, %c0_2] : memref<256x128xf32, #tpu.memory_space<vmem>>, vector<256x128xf32>
    %cst = arith.constant dense<0.000000e+00> : vector<8x128xf32>
    %2 = tpu.matmul %0, %1, %cst {dimension_numbers = #tpu.dot_dimension_numbers<[1], [0], [0], [1], [0, 0, 1, 1], [], []>} : vector<8x256xf32>, vector<256x128xf32>, vector<8x128xf32> -> vector<8x128xf32>
    %c0_3 = arith.constant 0 : index
    %c0_4 = arith.constant 0 : index
    %3 = vector.load %arg3[%c0_3, %c0_4] : memref<1x128xf32, #tpu.memory_space<vmem>>, vector<1x128xf32>
    %4 = vector.broadcast %3 : vector<1x128xf32> to vector<8x128xf32>
    %5 = arith.addf %2, %4 : vector<8x128xf32>
    %cst_5 = arith.constant 0.000000e+00 : f32
    %6 = vector.broadcast %cst_5 : f32 to vector<8x128xf32>
    %7 = arith.maximumf %5, %6 : vector<8x128xf32>
    %c0_6 = arith.constant 0 : index
    %c0_7 = arith.constant 0 : index
    %8 = vector.load %arg4[%c0_6, %c0_7] : memref<128x128xf32, #tpu.memory_space<vmem>>, vector<128x128xf32>
    %cst_8 = arith.constant dense<0.000000e+00> : vector<8x128xf32>
    %9 = tpu.matmul %7, %8, %cst_8 {dimension_numbers = #tpu.dot_dimension_numbers<[1], [0], [0], [1], [0, 0, 1, 1], [], []>} : vector<8x128xf32>, vector<128x128xf32>, vector<8x128xf32> -> vector<8x128xf32>
    %c0_9 = arith.constant 0 : index
    %c0_10 = arith.constant 0 : index
    %10 = vector.load %arg5[%c0_9, %c0_10] : memref<1x128xf32, #tpu.memory_space<vmem>>, vector<1x128xf32>
    %11 = vector.broadcast %10 : vector<1x128xf32> to vector<8x128xf32>
    %12 = arith.addf %9, %11 : vector<8x128xf32>
    %cst_11 = arith.constant 0.000000e+00 : f32
    %13 = vector.broadcast %cst_11 : f32 to vector<8x128xf32>
    %14 = arith.maximumf %12, %13 : vector<8x128xf32>
    %c0_12 = arith.constant 0 : index
    %c0_13 = arith.constant 0 : index
    %15 = vector.load %arg6[%c0_12, %c0_13] : memref<128x128xf32, #tpu.memory_space<vmem>>, vector<128x128xf32>
    %cst_14 = arith.constant dense<0.000000e+00> : vector<8x128xf32>
    %16 = tpu.matmul %14, %15, %cst_14 {dimension_numbers = #tpu.dot_dimension_numbers<[1], [0], [0], [1], [0, 0, 1, 1], [], []>} : vector<8x128xf32>, vector<128x128xf32>, vector<8x128xf32> -> vector<8x128xf32>
    %c0_15 = arith.constant 0 : index
    %c0_16 = arith.constant 0 : index
    %17 = vector.load %arg7[%c0_15, %c0_16] : memref<1x128xf32, #tpu.memory_space<vmem>>, vector<1x128xf32>
    %18 = vector.broadcast %17 : vector<1x128xf32> to vector<8x128xf32>
    %19 = arith.addf %16, %18 : vector<8x128xf32>
    %cst_17 = arith.constant dense<0xFF800000> : vector<8xf32>
    %20 = vector.multi_reduction <maximumf>, %19, %cst_17 [1] : vector<8x128xf32> to vector<8xf32>
    %21 = vector.shape_cast %20 : vector<8xf32> to vector<8x1xf32>
    %22 = vector.broadcast %21 : vector<8x1xf32> to vector<8x128xf32>
    %23 = arith.subf %19, %22 : vector<8x128xf32>
    %24 = math.exp %23 : vector<8x128xf32>
    %cst_18 = arith.constant dense<0.000000e+00> : vector<8xf32>
    %25 = vector.multi_reduction <add>, %24, %cst_18 [1] : vector<8x128xf32> to vector<8xf32>
    %26 = vector.shape_cast %25 : vector<8xf32> to vector<8x1xf32>
    %27 = math.log %26 : vector<8x1xf32>
    %28 = vector.broadcast %27 : vector<8x1xf32> to vector<8x128xf32>
    %29 = arith.subf %23, %28 : vector<8x128xf32>
    %c0_19 = arith.constant 0 : index
    %c0_20 = arith.constant 0 : index
    %30 = vector.load %arg8[%c0_19, %c0_20] : memref<8x128xf32, #tpu.memory_space<vmem>>, vector<8x128xf32>
    tpu.vector_store %arg8[%c0_19, %c0_20], %29 {strides = array<i32>} : memref<8x128xf32, #tpu.memory_space<vmem>>, vector<8x128xf32>,
    return
  }
  func.func @transform_0(%arg0: i32) -> (i32, i32) {
    %c0_i32 = arith.constant 0 : i32
    %c0_i32_0 = arith.constant 0 : i32
    return %arg0, %c0_i32 : i32, i32
  }
  func.func @transform_1(%arg0: i32) -> (i32, i32) {
    %c0_i32 = arith.constant 0 : i32
    %c0_i32_0 = arith.constant 0 : i32
    %c0_i32_1 = arith.constant 0 : i32
    return %c0_i32, %c0_i32_0 : i32, i32
  }
  func.func @transform_2(%arg0: i32) -> (i32, i32) {
    %c0_i32 = arith.constant 0 : i32
    %c0_i32_0 = arith.constant 0 : i32
    %c0_i32_1 = arith.constant 0 : i32
    return %c0_i32, %c0_i32_0 : i32, i32
  }
  func.func @transform_3(%arg0: i32) -> (i32, i32) {
    %c0_i32 = arith.constant 0 : i32
    %c0_i32_0 = arith.constant 0 : i32
    %c0_i32_1 = arith.constant 0 : i32
    return %c0_i32, %c0_i32_0 : i32, i32
  }
  func.func @transform_4(%arg0: i32) -> (i32, i32) {
    %c0_i32 = arith.constant 0 : i32
    %c0_i32_0 = arith.constant 0 : i32
    %c0_i32_1 = arith.constant 0 : i32
    return %c0_i32, %c0_i32_0 : i32, i32
  }
  func.func @transform_5(%arg0: i32) -> (i32, i32) {
    %c0_i32 = arith.constant 0 : i32
    %c0_i32_0 = arith.constant 0 : i32
    %c0_i32_1 = arith.constant 0 : i32
    return %c0_i32, %c0_i32_0 : i32, i32
  }
  func.func @transform_6(%arg0: i32) -> (i32, i32) {
    %c0_i32 = arith.constant 0 : i32
    %c0_i32_0 = arith.constant 0 : i32
    %c0_i32_1 = arith.constant 0 : i32
    return %c0_i32, %c0_i32_0 : i32, i32
  }
  func.func @transform_7(%arg0: i32) -> (i32, i32) {
    %c0_i32 = arith.constant 0 : i32
    %c0_i32_0 = arith.constant 0 : i32
    return %arg0, %c0_i32 : i32, i32
  }
}

</mosaic_0001>

<bundles_post_ra>
// kernel: model_b_forward.1
= control target key start
LH: loop header
LB: loop body
LE: loop exit
PB: predicated region body
PF: predicated region fallthrough
CT: control target
= control target key end

     0   :  { %12 = vsyncpa [#allocation3], 0  ;;  %s753_s0 = inlined_call_operand.vmem [shape: f32[8,256], index: 0, kind: input, shape index: {}]   ;;  %s754_s1 = inlined_call_operand.hbm [shape: f32[256,128], index: 1, kind: input, shape index: {}]   ;;  %s755_s2 = inlined_call_operand.vmem [shape: f32[1,128], index: 2, kind: input, shape index: {}]   ;;  %s756_s3 = inlined_call_operand.vmem [shape: f32[128,128], index: 3, kind: input, shape index: {}]   ;;  %s757_s4 = inlined_call_operand.vmem [shape: f32[1,128], index: 4, kind: input, shape index: {}]   ;;  %s758_s5 = inlined_call_operand.hbm [shape: f32[128,128], index: 5, kind: input, shape index: {}]   ;;  %s759_s6 = inlined_call_operand.vmem [shape: f32[1,128], index: 6, kind: input, shape index: {}]   ;;  %s760_s7 = inlined_call_operand.hbm [shape: f32[8,128], index: 7, kind: output, shape index: {}]  }
   0x1   :  { %13 = vsyncpa [#allocation6], 0 }
   0x2   :  { %14 = vsyncpa [#allocation4], 0  ;;  %s600_s24 = smov [#allocation2]  }
   0x3   :  { %s22_s25 = sshll.u32 %s600_s24, 4  ;;  %s23_s25 = int_to_ptr.vmem [resolvable:$true] %s22_s25 }
   0x4   :  { %s542_s26 = scalar_lea.vmem %s23_s25, 4096  ;;  %p547_p1 = scmp.lt.s32.totalorder %s23_s25, %s23_s25 }
   0x5   :  { %p543_p0 = scmp.ne.s32.totalorder %s23_s25, %s542_s26  ;;  %p548_p2 = scmp.lt.s32.totalorder %s542_s26, %s542_s26 }
   0x7   :  { %p549_p3 = por %p548_p2, %p547_p1 }
   0x9   :  { %p550_p4 = pnand %p549_p3, %p543_p0 }
   0xb   :  { %553 = shalt.err (!%p550_p4)
}
   0xc   :  { %s601_s27 = smov 128   ;;  %s602_s28 = smov 8  }
   0xd   :  { %28 = dma.hbm_to_vmem [thread:$0]  %s754_s1, 4096, %s23_s25, [#allocation3], %s601_s27, %s601_s27, %s602_s28  }
   0xe   :  { %s603_s8 = smov [#allocation5]  }
   0xf   :  { %s40_s9 = sshll.u32 %s603_s8, 4  ;;  %s41_s9 = int_to_ptr.vmem [resolvable:$true] %s40_s9 }
  0x10   :  { %s562_s10 = scalar_lea.vmem %s41_s9, 2048  ;;  %p567_p6 = scmp.lt.s32.totalorder %s41_s9, %s41_s9 }
  0x11   :  { %p563_p5 = scmp.ne.s32.totalorder %s41_s9, %s562_s10  ;;  %p568_p7 = scmp.lt.s32.totalorder %s562_s10, %s562_s10 }
  0x13   :  { %p569_p8 = por %p568_p7, %p567_p6 }
  0x15   :  { %p570_p9 = pnand %p569_p8, %p563_p5 }
  0x17   :  { %573 = shalt.err (!%p570_p9)
}
  0x18   :  { %46 = dma.hbm_to_vmem [thread:$0]  %s758_s5, 2048, %s41_s9, [#allocation6], %s601_s27, %s601_s27, %s602_s28  }
  0x19   :  { %594 = dma.done.wait [#allocation3], 4096  }
  0x1a   :  { %595 = vsyncadd [#allocation3], 4294963200 }
  0x1b   :  { %596 = dma.done.wait [#allocation6], 2048  }
  0x1c   :  { %597 = vsyncadd [#allocation6], 4294965248  ;;  %v604_v0 = vmov 0.0   ;;  %v88_v1 = vld [vmem:[#allocation2 + $0xf8] sm:$0xff]  ;;  %v87_v3 = vld [vmem:[#allocation2 + $0xf0] sm:$0xff]  ;;  %vm605_vm0 = vmmov 0  }
  0x1d   :  { %453 = vmatprep.subr.mxu1 %v604_v0  ;;  %v72_v2 = vld [vmem:[#allocation2 + $0x78] sm:$0xff]  ;;  %384 = vmatprep.subr.mxu0 %v88_v1  ;;  %v71_v4 = vld [vmem:[#allocation2 + $0x70] sm:$0xff]  ;;  %v86_v5 = vld [vmem:[#allocation2 + $0xe8] sm:$0xff] }
  0x1e   :  { %385 = vmatpush3.msra.mxu0 %v72_v2  ;;  %v70_v6 = vld [vmem:[#allocation2 + $0x68] sm:$0xff]  ;;  %v85_v7 = vld [vmem:[#allocation2 + $0xe0] sm:$0xff]  ;;  %v84_v9 = vld [vmem:[#allocation2 + $0xd8] sm:$0xff]  ;;  %485 = vmatprep.mubr.msk.f32.mxu1 %vm605_vm0, %v604_v0 }
  0x1f   :  { %386 = vmatprep.subr.mxu0 %v87_v3  ;;  %v69_v8 = vld [vmem:[#allocation2 + $0x60] sm:$0xff]  ;;  %v68_v10 = vld [vmem:[#allocation2 + $0x58] sm:$0xff]  ;;  %v83_v11 = vld [vmem:[#allocation2 + $0xd0] sm:$0xff] }
  0x20   :  { %387 = vmatpush3.msra.mxu0 %v71_v4  ;;  %v67_v12 = vld [vmem:[#allocation2 + $0x50] sm:$0xff]  ;;  %v82_v13 = vld [vmem:[#allocation2 + $0xc8] sm:$0xff]  ;;  %v182_v16 = vld [vmem:[%s756_s3 + $0x78] sm:$0xff] }
  0x21   :  { %388 = vmatprep.subr.mxu0 %v86_v5  ;;  %v56_v14 = vld [vmem:[%s753_s0 + $0x8] sm:$0xff]  ;;  %v181_v17 = vld [vmem:[%s756_s3 + $0x70] sm:$0xff]  ;;  %v81_v18 = vld [vmem:[#allocation2 + $0xc0] sm:$0xff]  ;;  %454 = vmatpush3.msra.mxu1 %v182_v16 }
  0x22   :  { %389 = vmatpush3.msra.mxu0 %v70_v6  ;;  %v66_v15 = vld [vmem:[#allocation2 + $0x48] sm:$0xff]  ;;  %160 = vmatprep.mubr.f32.mxu0 %v56_v14  ;;  %v65_v19 = vld [vmem:[#allocation2 + $0x40] sm:$0xff]  ;;  %v80_v21 = vld [vmem:[#allocation2 + $0xb8] sm:$0xff] }
  0x23   :  { %390 = vmatprep.subr.mxu0 %v85_v7  ;;  %455 = vmatprep.subr.mxu1 %v604_v0  ;;  %v180_v20 = vld [vmem:[%s756_s3 + $0x68] sm:$0xff]  ;;  %v64_v22 = vld [vmem:[#allocation2 + $0x38] sm:$0xff]  ;;  %v179_v23 = vld [vmem:[%s756_s3 + $0x60] sm:$0xff] }
  0x24   :  { %391 = vmatpush3.msra.mxu0 %v69_v8  ;;  %456 = vmatpush3.msra.mxu1 %v181_v17  ;;  %v79_v24 = vld [vmem:[#allocation2 + $0xb0] sm:$0xff]  ;;  %v178_v26 = vld [vmem:[%s756_s3 + $0x58] sm:$0xff]  ;;  %v78_v27 = vld [vmem:[#allocation2 + $0xa8] sm:$0xff] }
  0x25   :  { %392 = vmatprep.subr.mxu0 %v84_v9  ;;  %457 = vmatprep.subr.mxu1 %v604_v0  ;;  %v63_v25 = vld [vmem:[#allocation2 + $0x30] sm:$0xff]  ;;  %v62_v28 = vld [vmem:[#allocation2 + $0x28] sm:$0xff]  ;;  %v77_v30 = vld [vmem:[#allocation2 + $0xa0] sm:$0xff] }
  0x26   :  { %393 = vmatpush3.msra.mxu0 %v68_v10  ;;  %458 = vmatpush3.msra.mxu1 %v180_v20  ;;  %v177_v29 = vld [vmem:[%s756_s3 + $0x50] sm:$0xff]  ;;  %v61_v31 = vld [vmem:[#allocation2 + $0x20] sm:$0xff]  ;;  %v176_v32 = vld [vmem:[%s756_s3 + $0x48] sm:$0xff] }
  0x27   :  { %394 = vmatprep.subr.mxu0 %v83_v11  ;;  %459 = vmatprep.subr.mxu1 %v604_v0  ;;  %v76_v33 = vld [vmem:[#allocation2 + $0x98] sm:$0xff]  ;;  %v175_v35 = vld [vmem:[%s756_s3 + $0x40] sm:$0xff]  ;;  %v75_v36 = vld [vmem:[#allocation2 + $0x90] sm:$0xff] }
  0x28   :  { %395 = vmatpush3.msra.mxu0 %v67_v12  ;;  %460 = vmatpush3.msra.mxu1 %v179_v23  ;;  %v60_v34 = vld [vmem:[#allocation2 + $0x18] sm:$0xff]  ;;  %v59_v37 = vld [vmem:[#allocation2 + $0x10] sm:$0xff]  ;;  %v74_v39 = vld [vmem:[#allocation2 + $0x88] sm:$0xff] }
  0x29   :  { %396 = vmatprep.subr.mxu0 %v82_v13  ;;  %461 = vmatprep.subr.mxu1 %v604_v0  ;;  %v174_v38 = vld [vmem:[%s756_s3 + $0x38] sm:$0xff]  ;;  %v58_v40 = vld [vmem:[#allocation2 + $0x8] sm:$0xff]  ;;  %v173_v41 = vld [vmem:[%s756_s3 + $0x30] sm:$0xff] }
  0x2a   :  { %397 = vmatpush3.msra.mxu0 %v66_v15  ;;  %462 = vmatpush3.msra.mxu1 %v178_v26  ;;  %v73_v42 = vld [vmem:[#allocation2 + $0x80] sm:$0xff]  ;;  %v172_v44 = vld [vmem:[%s756_s3 + $0x28] sm:$0xff]  ;;  %v170_v47 = vld [vmem:[%s756_s3 + $0x18] sm:$0xff] }
  0x2b   :  { %398 = vmatprep.subr.mxu0 %v81_v18  ;;  %463 = vmatprep.subr.mxu1 %v604_v0  ;;  %v57_v43 = vld [vmem:[#allocation2] sm:$0xff]  ;;  %v169_v48 = vld [vmem:[%s756_s3 + $0x10] sm:$0xff]  ;;  %v168_v49 = vld [vmem:[%s756_s3 + $0x8] sm:$0xff] }
  0x2c   :  { %399 = vmatpush3.msra.mxu0 %v65_v19  ;;  %464 = vmatpush3.msra.mxu1 %v177_v29  ;;  %v55_v45 = vld [vmem:[%s753_s0] sm:$0xff]  ;;  %v276_v51 = vld [vmem:[#allocation5 + $0x78] sm:$0xff]  ;;  %v275_v52 = vld [vmem:[#allocation5 + $0x70] sm:$0xff] }
  0x2d   :  { %400 = vmatprep.subr.mxu0 %v80_v21  ;;  %465 = vmatprep.subr.mxu1 %v604_v0  ;;  %v171_v46 = vld [vmem:[%s756_s3 + $0x20] sm:$0xff]  ;;  %v274_v53 = vld [vmem:[#allocation5 + $0x68] sm:$0xff]  ;;  %v272_v55 = vld [vmem:[#allocation5 + $0x58] sm:$0xff] }
  0x2e   :  { %401 = vmatpush3.msra.mxu0 %v64_v22  ;;  %466 = vmatpush3.msra.mxu1 %v176_v32  ;;  %v167_v50 = vld [vmem:[%s756_s3] sm:$0xff]  ;;  %v271_v56 = vld [vmem:[#allocation5 + $0x50] sm:$0xff]  ;;  %v270_v57 = vld [vmem:[#allocation5 + $0x48] sm:$0xff] }
  0x2f   :  { %402 = vmatprep.subr.mxu0 %v79_v24  ;;  %467 = vmatprep.subr.mxu1 %v604_v0  ;;  %v273_v54 = vld [vmem:[#allocation5 + $0x60] sm:$0xff]  ;;  %v268_v59 = vld [vmem:[#allocation5 + $0x38] sm:$0xff]  ;;  %v267_v60 = vld [vmem:[#allocation5 + $0x30] sm:$0xff] }
  0x30   :  { %403 = vmatpush3.msra.mxu0 %v63_v25  ;;  %468 = vmatpush3.msra.mxu1 %v175_v35  ;;  %v269_v58 = vld [vmem:[#allocation5 + $0x40] sm:$0xff]  ;;  %v266_v61 = vld [vmem:[#allocation5 + $0x28] sm:$0xff]  ;;  %v264_v63 = vld [vmem:[#allocation5 + $0x18] sm:$0xff] }
  0x31   :  { %404 = vmatprep.subr.mxu0 %v78_v27  ;;  %469 = vmatprep.subr.mxu1 %v604_v0  ;;  %v265_v62 = vld [vmem:[#allocation5 + $0x20] sm:$0xff]  ;;  %v263_v7 = vld [vmem:[#allocation5 + $0x10] sm:$0xff]  ;;  %v262_v8 = vld [vmem:[#allocation5 + $0x8] sm:$0xff] }
  0x32   :  { %405 = vmatpush3.msra.mxu0 %v62_v28  ;;  %470 = vmatpush3.msra.mxu1 %v174_v38  ;;  %v381_v2 = vld [vmem:[%s755_s2] ss:$0 sm:$0xff] }
  0x33   :  { %406 = vmatprep.subr.mxu0 %v77_v30  ;;  %471 = vmatprep.subr.mxu1 %v604_v0  ;;  %v261_v9 = vld [vmem:[#allocation5] sm:$0xff] }
  0x34   :  { %407 = vmatpush3.msra.mxu0 %v61_v31  ;;  %472 = vmatpush3.msra.mxu1 %v173_v41  ;;  %v382_v10 = vld [vmem:[%s757_s4] ss:$0 sm:$0xff]  ;;  %s606_s4 = smov [#allocation7]  }
  0x35   :  { %408 = vmatprep.subr.mxu0 %v76_v33  ;;  %473 = vmatprep.subr.mxu1 %v604_v0  ;;  %v383_v15 = vld [vmem:[%s759_s6] ss:$0 sm:$0xff]  ;;  %s371_s25 = sshll.u32 %s606_s4, 4  ;;  %s372_s25 = int_to_ptr.vmem [resolvable:$true] %s371_s25 }
  0x36   :  { %409 = vmatpush3.msra.mxu0 %v60_v34  ;;  %474 = vmatpush3.msra.mxu1 %v172_v44  ;;  %s574_s6 = scalar_lea.vmem %s372_s25, 128  ;;  %p579_p11 = scmp.lt.s32.totalorder %s372_s25, %s372_s25 }
  0x37   :  { %410 = vmatprep.subr.mxu0 %v75_v36  ;;  %475 = vmatprep.subr.mxu1 %v604_v0  ;;  %p575_p10 = scmp.ne.s32.totalorder %s372_s25, %s574_s6  ;;  %p580_p12 = scmp.lt.s32.totalorder %s574_s6, %s574_s6 }
  0x38   :  { %411 = vmatpush3.msra.mxu0 %v59_v37  ;;  %476 = vmatpush3.msra.mxu1 %v171_v46 }
  0x39   :  { %412 = vmatprep.subr.mxu0 %v74_v39  ;;  %477 = vmatprep.subr.mxu1 %v604_v0  ;;  %p581_p13 = por %p580_p12, %p579_p11 }
  0x3a   :  { %413 = vmatpush3.msra.mxu0 %v58_v40  ;;  %478 = vmatpush3.msra.mxu1 %v170_v47 }
  0x3b   :  { %414 = vmatprep.subr.mxu0 %v73_v42  ;;  %479 = vmatprep.subr.mxu1 %v604_v0  ;;  %p582_p0 = pnand %p581_p13, %p575_p10 }
  0x3c   :  { %415 = vmatpush3.msra.mxu0 %v57_v43  ;;  %480 = vmatpush3.msra.mxu1 %v169_v48 }
  0x3d   :  { %161 = vmatmul.mubr.f32.vlgmr.msra.gmra.mxu0 %v55_v45  ;;  %488 = vmatprep.subr.mxu0 %v604_v0 }
  0x3e   :  { %481 = vmatprep.subr.mxu1 %v604_v0  ;;  %520 = vmatprep.mubr.msk.f32.mxu0 %vm605_vm0, %v604_v0 }
  0x3f   :  { %482 = vmatpush3.msra.mxu1 %v168_v49  ;;  %489 = vmatpush3.msra.mxu0 %v276_v51 }
  0x40   :  { %483 = vmatprep.subr.mxu1 %v604_v0  ;;  %490 = vmatprep.subr.mxu0 %v604_v0 }
  0x41   :  { %484 = vmatpush3.msra.mxu1 %v167_v50  ;;  %491 = vmatpush3.msra.mxu0 %v275_v52 }
  0x42   :  { %492 = vmatprep.subr.mxu0 %v604_v0 }
  0x43   :  { %493 = vmatpush3.msra.mxu0 %v274_v53 }
  0x44   :  { %494 = vmatprep.subr.mxu0 %v604_v0 }
  0x45   :  { %495 = vmatpush3.msra.mxu0 %v273_v54 }
  0x46   :  { %496 = vmatprep.subr.mxu0 %v604_v0 }
  0x47   :  { %497 = vmatpush3.msra.mxu0 %v272_v55 }
  0x48   :  { %498 = vmatprep.subr.mxu0 %v604_v0 }
  0x49   :  { %499 = vmatpush3.msra.mxu0 %v271_v56 }
  0x4a   :  { %500 = vmatprep.subr.mxu0 %v604_v0 }
  0x4b   :  { %501 = vmatpush3.msra.mxu0 %v270_v57 }
  0x4c   :  { %502 = vmatprep.subr.mxu0 %v604_v0 }
  0x4d   :  { %503 = vmatpush3.msra.mxu0 %v269_v58 }
  0x4e   :  { %504 = vmatprep.subr.mxu0 %v604_v0 }
  0x4f   :  { %505 = vmatpush3.msra.mxu0 %v268_v59 }
  0x50   :  { %506 = vmatprep.subr.mxu0 %v604_v0 }
  0x51   :  { %507 = vmatpush3.msra.mxu0 %v267_v60 }
  0x52   :  { %508 = vmatprep.subr.mxu0 %v604_v0 }
  0x53   :  { %509 = vmatpush3.msra.mxu0 %v266_v61 }
  0x54   :  { %510 = vmatprep.subr.mxu0 %v604_v0 }
  0x55   :  { %511 = vmatpush3.msra.mxu0 %v265_v62 }
  0x56   :  { %512 = vmatprep.subr.mxu0 %v604_v0 }
  0x57   :  { %513 = vmatpush3.msra.mxu0 %v264_v63 }
  0x58   :  { %514 = vmatprep.subr.mxu0 %v604_v0 }
  0x59   :  { %515 = vmatpush3.msra.mxu0 %v263_v7 }
  0x5a   :  { %516 = vmatprep.subr.mxu0 %v604_v0 }
  0x5b   :  { %517 = vmatpush3.msra.mxu0 %v262_v8 }
  0x5c   :  { %518 = vmatprep.subr.mxu0 %v604_v0 }
  0x5d   :  { %519 = vmatpush3.msra.mxu0 %v261_v9 }
  0xfd   :  { %v416_v1 = vpop.f32.mrf.mxu0 }
  0xff   :  { %v417_v3 = vpop.f32.mrf.mxu0 }
 0x100   :  { %v418_v4 = vadd.f32 %v417_v3, %v416_v1 }
 0x102   :  { %v163_v5 = vadd.f32 %v418_v4, %v381_v2 }
 0x104   :  { %v166_v6 = vmax.f32 %v163_v5, 0.0 }
 0x106   :  { %486 = vmatmul.mubr.f32.vlgmr.msra.gmra.mxu1 %v166_v6 }
 0x1c6   :  { %v256_v11 = vpop.f32.mrf.mxu1 }
 0x1c7   :  { %v257_v12 = vadd.f32 %v382_v10, %v256_v11 }
 0x1c8   :  { %v487_v13 = vpop.f32.mrf.mxu1 }
 0x1c9   :  { %v260_v14 = vmax.f32 %v257_v12, 0.0 }
 0x1cb   :  { %521 = vmatmul.mubr.f32.vlgmr.msra.gmra.mxu0 %v260_v14 }
 0x28b   :  { %v350_v16 = vpop.f32.mrf.mxu0 }
 0x28c   :  { %v351_v17 = vadd.f32 %v383_v15, %v350_v16 }
 0x28d   :  { %v522_v18 = vpop.f32.mrf.mxu0 }
 0x28e   :  { %354 = vmax.xlane.f32.xlu0 %v351_v17 }
 0x317   :  { %v355_v0 = vpop.xlane.xlu0 %354 }
 0x318   :  { %v356_v19 = vsub.f32 %v351_v17, %v355_v0 }
 0x31a   :  { %v357_v20 = vmul.f32 1.442695, %v356_v19 }
 0x31c   :  { %530 = vpow2.f32 %v357_v20 }
 0x329   :  { %v531_v21 = vpop.eup %530 }
 0x32a   :  { %359 = vadd.xlane.f32.xlu0 %v531_v21 }
 0x3b3   :  { %v360_v22 = vpop.xlane.xlu0 %359 }
 0x3b4   :  { %532 = vlog2.f32 %v360_v22 }
 0x3c1   :  { %v533_v23 = vpop.eup %532 }
 0x3c2   :  { %v362_v24 = vmul.f32 0.6931472, %v533_v23 }
 0x3c4   :  { %v363_v25 = vsub.f32 %v356_v19, %v362_v24 }
 0x3c6   :  { %364 = vst [vmem:[#allocation7] sm:$0xff] %v363_v25 }
 0x3c7   :  { %585 = shalt.err (!%p582_p0)
}
 0x3c8   :  { %374 = dma.vmem_to_hbm [thread:$0]  %s372_s25, 128, %s760_s7, [#allocation4]  }
 0x3c9   :  { %598 = dma.done.wait [#allocation4], 128  }
 0x3ca   :  { %599 = vsyncadd [#allocation4], 4294967168 }
 0x3cb   :  { %378 = vsyncpa [#allocation3], 1 }
 0x3cc   :  { %379 = vsyncpa [#allocation6], 1 }
 0x3cd   :  { %380 = vsyncpa [#allocation4], 1 }

</bundles_post_ra>
